<compile_context>
chip_gen: v7x
topology: tpu7x:2x2x1
jax: 0.10.0
libtpu: 0.0.40
codegen_flags: <defaults>
</compile_context>

<pallas_src>
import numpy as np

import jax
import jax.numpy as jnp
from jax import lax
from jax.experimental import pallas as pl
from jax.experimental.pallas import tpu as pltpu

BN_EPS = 1e-5
SUBLANE = 8
DEFAULT_BLOCK_ROWS = 2048


def _round_up(x, m):
    return (x + m - 1) // m * m


def _cdiv(a, b):
    return -(-a // b)


# ---------------------------------------------------------------------------
# Pass 1: matmul + per-channel sum / sumsq accumulation (BN batch statistics).
# ---------------------------------------------------------------------------
def _make_stats_kernel(n, tm, tiles_per_split):
    """Stats kernel with n / tile geometry baked in as trace-time constants."""

    def kernel(x_ref, w_ref, stats_ref):
        s = pl.program_id(0)          # core-parallel split (v7x: one per TC)
        i = pl.program_id(1)          # row-reduction axis within the split
        z = jnp.dot(x_ref[...], w_ref[...], preferred_element_type=jnp.float32)
        # Mask rows past the true N (ragged last block may contain garbage;
        # use where, not multiply, so NaN/Inf cannot leak into the sums).
        row = (s * tiles_per_split + i) * tm + lax.broadcasted_iota(
            jnp.int32, (tm, 1), 0)
        z = jnp.where(row < n, z, 0.0)
        ssum = jnp.sum(z, axis=0, keepdims=True)        # (1, C)
        ssq = jnp.sum(z * z, axis=0, keepdims=True)     # (1, C)

        @pl.when(i == 0)
        def _():
            stats_ref[...] = jnp.zeros_like(stats_ref)

        stats_ref[...] += jnp.concatenate([ssum, ssq], axis=0)[None]  # (1,2,C)

    return kernel


# ---------------------------------------------------------------------------
# Pass 2: matmul (with folded BN affine) + ReLU (+ optional fused residual add).
# ---------------------------------------------------------------------------
def _linear_relu_kernel(x_ref, w_ref, b_ref, o_ref):
    y = jnp.dot(x_ref[...], w_ref[...], preferred_element_type=jnp.float32) + b_ref[...]
    o_ref[...] = jnp.maximum(y, 0.0).astype(o_ref.dtype)


def _linear_relu_add_kernel(x_ref, w_ref, b_ref, r_ref, o_ref):
    y = jnp.dot(x_ref[...], w_ref[...], preferred_element_type=jnp.float32) + b_ref[...]
    o_ref[...] = (jnp.maximum(y, 0.0) + r_ref[...]).astype(o_ref.dtype)


def _run_linear_relu(x, w, b2d, residual, tm):
    n, k = x.shape
    c = w.shape[1]
    in_specs = [
        pl.BlockSpec((tm, k), lambda i: (i, 0)),
        pl.BlockSpec((k, c), lambda i: (0, 0)),   # weight resident across steps
        pl.BlockSpec((1, c), lambda i: (0, 0)),
    ]
    args = [x, w, b2d]
    kernel = _linear_relu_kernel
    if residual is not None:
        in_specs.append(pl.BlockSpec((tm, c), lambda i: (i, 0)))
        args.append(residual)
        kernel = _linear_relu_add_kernel
    return pl.pallas_call(
        kernel,
        out_shape=jax.ShapeDtypeStruct((n, c), jnp.float32),
        grid_spec=pltpu.PrefetchScalarGridSpec(
            num_scalar_prefetch=0,
            grid=(_cdiv(n, tm),),
            in_specs=in_specs,
            out_specs=pl.BlockSpec((tm, c), lambda i: (i, 0)),
        ),
        compiler_params=pltpu.CompilerParams(
            dimension_semantics=("parallel",)),
    )(*args)


def pallas_linear_relu(x, w, b, residual=None, block_rows=DEFAULT_BLOCK_ROWS):
    """ReLU(x @ w + b) (+ residual), row-tiled, no HBM padding/slicing."""
    n = x.shape[0]
    c = w.shape[1]
    tm = min(block_rows, _round_up(n, SUBLANE))
    return _run_linear_relu(x, w, b.reshape(1, c), residual, tm)


def pallas_linear_bn_relu(x, w, b, gamma, beta, residual=None,
                          block_rows=DEFAULT_BLOCK_ROWS):
    """ReLU(BatchNorm1d(x @ w + b)) (+ residual); BN uses batch stats (train mode)."""
    n, k = x.shape
    c = w.shape[1]
    tm = min(block_rows, _round_up(n, SUBLANE))
    tiles = _cdiv(n, tm)
    # Core-parallel split of the stats reduction (useful on v7x's 2 TCs).
    # Only split when tiles is even so no block index is ever fully out of bounds.
    n_split = 2 if (tiles >= 2 and tiles % 2 == 0) else 1
    tiles_per_split = tiles // n_split

    # ---- pass 1: per-channel sum / sumsq of z = x @ w over the true batch ----
    stats = pl.pallas_call(
        _make_stats_kernel(n, tm, tiles_per_split),
        out_shape=jax.ShapeDtypeStruct((n_split, 2, c), jnp.float32),
        grid_spec=pltpu.PrefetchScalarGridSpec(
            num_scalar_prefetch=0,
            grid=(n_split, tiles_per_split),
            in_specs=[
                pl.BlockSpec((tm, k), lambda s, i: (s * tiles_per_split + i, 0)),
                pl.BlockSpec((k, c), lambda s, i: (0, 0)),
            ],
            out_specs=pl.BlockSpec((1, 2, c), lambda s, i: (s, 0, 0)),
        ),
        compiler_params=pltpu.CompilerParams(
            dimension_semantics=("parallel", "arbitrary")),
    )(x, w)

    s_sum = jnp.sum(stats[:, 0, :], axis=0)
    s_sq = jnp.sum(stats[:, 1, :], axis=0)
    mean_z = s_sum / n
    # NOTE: E[z^2]-E[z]^2 in f32 (bias already excluded, which keeps |mean|
    # moderate); can cancel if |mean| >> std for extreme activation scales.
    var = jnp.maximum(s_sq / n - mean_z * mean_z, 0.0)   # biased var, BN train mode
    scale = gamma * lax.rsqrt(var + BN_EPS)
    # BN((x@w + b)) = (x@w - mean_z)*scale + beta  (the linear bias cancels).
    w_fold = w * scale[None, :]
    b_fold = (beta - mean_z * scale).reshape(1, c)

    # ---- pass 2: folded matmul + ReLU (+ fused residual) ----
    return _run_linear_relu(x, w_fold, b_fold, residual, tm)


# ---------------------------------------------------------------------------
# Glue: ragged per-segment ops and pointops.interpolation in plain JAX.
# ---------------------------------------------------------------------------
def interpolation(p_src, p_dst, feat_src, o_src, o_dst, k=3):
    """Inverse-distance k-NN interpolation from coarse (p_src) to fine (p_dst)."""
    # TODO(synk): segment-local kNN + weighted gather is a data-dependent gather
    #             with no clean Pallas TPU equivalent; implemented in plain JAX.
    outs = []
    ss, sd = 0, 0
    for es, ed in zip(o_src, o_dst):
        ps, pd, fs = p_src[ss:es], p_dst[sd:ed], feat_src[ss:es]
        d2 = jnp.sum((pd[:, None, :] - ps[None, :, :]) ** 2, axis=-1)
        neg_d2, idx = lax.top_k(-d2, k)
        dist = jnp.sqrt(jnp.maximum(-neg_d2, 0.0))
        w = 1.0 / (dist + 1e-8)
        w = w / jnp.sum(w, axis=1, keepdims=True)
        outs.append(jnp.sum(fs[idx] * w[..., None], axis=1))
        ss, sd = es, ed
    return jnp.concatenate(outs, axis=0)


def transition_up(params, pnxo1, pnxo2=None, block_rows=DEFAULT_BLOCK_ROWS):
    """Forward pass of TransitionUp.  Offsets are static python lists of ints."""
    if pnxo2 is None:
        # summary branch: concat(x, broadcast(linear2(segment mean))) -> linear1
        _, _, x, o = pnxo1
        counts = np.diff([0] + list(o)).astype(np.int64)
        seg_ids = jnp.asarray(np.repeat(np.arange(len(o)), counts), jnp.int32)
        sums = jax.ops.segment_sum(x, seg_ids, num_segments=len(o))
        m = sums / jnp.asarray(counts, jnp.float32)[:, None]          # (B, C)
        g = pallas_linear_relu(m, params["w2"], params["b2"],
                               block_rows=block_rows)                 # linear2 (no BN)
        x_cat = jnp.concatenate([x, g[seg_ids]], axis=1)              # broadcast back
        return pallas_linear_bn_relu(x_cat, params["w1"], params["b1"],
                                     params["gamma1"], params["beta1"],
                                     block_rows=block_rows)
    else:
        # skip-connection branch: linear1(x1) + interpolation(linear2(x2))
        p1, _, x1, o1 = pnxo1
        p2, _, x2, o2 = pnxo2
        y2 = pallas_linear_bn_relu(x2, params["w2"], params["b2"],
                                   params["gamma2"], params["beta2"],
                                   block_rows=block_rows)
        up = interpolation(p2, p1, y2, o2, o1)
        # the "+" is fused into the pass-2 epilogue of linear1 (residual add)
        return pallas_linear_bn_relu(x1, params["w1"], params["b1"],
                                     params["gamma1"], params["beta1"],
                                     residual=up, block_rows=block_rows)


# ---------------------------------------------------------------------------
# Pure-JAX references for verification
# ---------------------------------------------------------------------------
def _ref_linear_relu(x, w, b):
    return jnp.maximum(x @ w + b, 0.0)


def _ref_linear_bn_relu(x, w, b, gamma, beta):
    y = x @ w + b
    mean = y.mean(0)
    var = ((y - mean) ** 2).mean(0)
    return jnp.maximum((y - mean) * lax.rsqrt(var + BN_EPS) * gamma + beta, 0.0)


def _ref_transition_up_single(params, x, o):
    outs, start = [], 0
    for end in o:
        xb = x[start:end]
        g = _ref_linear_relu(jnp.sum(xb, 0, keepdims=True) / (end - start),
                             params["w2"], params["b2"])
        outs.append(jnp.concatenate([xb, jnp.repeat(g, end - start, axis=0)], 1))
        start = end
    xc = jnp.concatenate(outs, 0)
    return _ref_linear_bn_relu(xc, params["w1"], params["b1"],
                               params["gamma1"], params["beta1"])


def _ref_transition_up_skip(params, p1, x1, o1, p2, x2, o2):
    y1 = _ref_linear_bn_relu(x1, params["w1"], params["b1"],
                             params["gamma1"], params["beta1"])
    y2 = _ref_linear_bn_relu(x2, params["w2"], params["b2"],
                             params["gamma2"], params["beta2"])
    return y1 + interpolation(p2, p1, y2, o2, o1)


if __name__ == "__main__":
    key = jax.random.PRNGKey(0)
    ks = jax.random.split(key, 24)

    # ---- branch A: pnxo2 is None (out_planes=None, in_planes=C) --------------
    C = 16
    o = [112, 224]                       # two packed point clouds
    N = o[-1]
    p = jax.random.normal(ks[0], (N, 3), jnp.float32)
    nrm = jax.random.normal(ks[1], (N, 3), jnp.float32)
    x = jax.random.normal(ks[2], (N, C), jnp.float32)
    params_a = {
        "w1": 0.2 * jax.random.normal(ks[3], (2 * C, C), jnp.float32),
        "b1": 0.1 * jax.random.normal(ks[4], (C,), jnp.float32),
        "gamma1": 1.0 + 0.1 * jax.random.normal(ks[5], (C,), jnp.float32),
        "beta1": 0.1 * jax.random.normal(ks[6], (C,), jnp.float32),
        "w2": 0.2 * jax.random.normal(ks[7], (C, C), jnp.float32),
        "b2": 0.1 * jax.random.normal(ks[8], (C,), jnp.float32),
    }
    # block_rows=64 -> 4 row tiles -> exercises the 2-way core-parallel stats
    # split, the cross-tile BN reduction, ragged-last-block masking and the
    # fused pass-2 epilogue at small shapes.
    out_a = jax.block_until_ready(
        transition_up(params_a, [p, nrm, x, o], None, block_rows=64))
    ref_a = _ref_transition_up_single(params_a, x, o)
    assert out_a.shape == (N, C)
    err_a = float(jnp.max(jnp.abs(out_a - ref_a)))
    assert err_a < 1e-3, f"branch A max abs err {err_a}"

    # ---- branch B: skip connection (in_planes=16 -> out_planes=8) ------------
    Ci, Co = 16, 8
    o1 = [112, 224]; N1 = o1[-1]         # fine level
    o2 = [28, 56];   N2 = o2[-1]         # coarse level
    p1 = jax.random.normal(ks[9], (N1, 3), jnp.float32)
    x1 = jax.random.normal(ks[10], (N1, Co), jnp.float32)
    p2 = jax.random.normal(ks[11], (N2, 3), jnp.float32)
    x2 = jax.random.normal(ks[12], (N2, Ci), jnp.float32)
    params_b = {
        "w1": 0.2 * jax.random.normal(ks[13], (Co, Co), jnp.float32),
        "b1": 0.1 * jax.random.normal(ks[14], (Co,), jnp.float32),
        "gamma1": 1.0 + 0.1 * jax.random.normal(ks[15], (Co,), jnp.float32),
        "beta1": 0.1 * jax.random.normal(ks[16], (Co,), jnp.float32),
        "w2": 0.2 * jax.random.normal(ks[17], (Ci, Co), jnp.float32),
        "b2": 0.1 * jax.random.normal(ks[18], (Co,), jnp.float32),
        "gamma2": 1.0 + 0.1 * jax.random.normal(ks[19], (Co,), jnp.float32),
        "beta2": 0.1 * jax.random.normal(ks[20], (Co,), jnp.float32),
    }
    # default block_rows -> single-tile path (tm = N rounded to 8) + residual fusion
    out_b = jax.block_until_ready(
        transition_up(params_b, [p1, None, x1, o1], [p2, None, x2, o2]))
    ref_b = _ref_transition_up_skip(params_b, p1, x1, o1, p2, x2, o2)
    assert out_b.shape == (N1, Co)
    err_b = float(jnp.max(jnp.abs(out_b - ref_b)))
    assert err_b < 1e-3, f"branch B max abs err {err_b}"

    print("KERNEL_OK")
</pallas_src>

<mosaic_0001>
module attributes {stable_mosaic.version = 11 : i64} {
  func.func @_linear_relu_kernel(%arg0: i32, %arg1: memref<8x16xf32, #tpu.memory_space<vmem>>, %arg2: memref<16x16xf32, #tpu.memory_space<vmem>>, %arg3: memref<1x16xf32, #tpu.memory_space<vmem>>, %arg4: memref<8x16xf32, #tpu.memory_space<vmem>>) attributes {dimension_semantics = [#tpu.dimension_semantics<parallel>], iteration_bounds = array<i64: 1>, scalar_prefetch = 0 : i64, scratch_operands = 0 : i64, tpu.core_type = #tpu.core_type<tc>, window_params = [{transform_indices = @transform_0, window_bounds = array<i64: 8, 16>}, {pipeline_mode = #tpu.pipeline_mode<synchronous>, transform_indices = @transform_1, window_bounds = array<i64: 16, 16>}, {pipeline_mode = #tpu.pipeline_mode<synchronous>, transform_indices = @transform_2, window_bounds = array<i64: 1, 16>}, {transform_indices = @transform_3, window_bounds = array<i64: 8, 16>}]} {
    %c0 = arith.constant 0 : index
    %c0_0 = arith.constant 0 : index
    %0 = vector.load %arg1[%c0, %c0_0] : memref<8x16xf32, #tpu.memory_space<vmem>>, vector<8x16xf32>
    %c0_1 = arith.constant 0 : index
    %c0_2 = arith.constant 0 : index
    %1 = vector.load %arg2[%c0_1, %c0_2] : memref<16x16xf32, #tpu.memory_space<vmem>>, vector<16x16xf32>
    %cst = arith.constant dense<0.000000e+00> : vector<8x16xf32>
    %2 = tpu.matmul %0, %1, %cst {dimension_numbers = #tpu.dot_dimension_numbers<[1], [0], [0], [1], [0, 0, 1, 1], [], []>} : vector<8x16xf32>, vector<16x16xf32>, vector<8x16xf32> -> vector<8x16xf32>
    %c0_3 = arith.constant 0 : index
    %c0_4 = arith.constant 0 : index
    %3 = vector.load %arg3[%c0_3, %c0_4] : memref<1x16xf32, #tpu.memory_space<vmem>>, vector<1x16xf32>
    %4 = vector.broadcast %3 : vector<1x16xf32> to vector<8x16xf32>
    %5 = arith.addf %2, %4 : vector<8x16xf32>
    %cst_5 = arith.constant 0.000000e+00 : f32
    %6 = vector.broadcast %cst_5 : f32 to vector<8x16xf32>
    %7 = arith.maximumf %5, %6 : vector<8x16xf32>
    %c0_6 = arith.constant 0 : index
    %c0_7 = arith.constant 0 : index
    %8 = vector.load %arg4[%c0_6, %c0_7] : memref<8x16xf32, #tpu.memory_space<vmem>>, vector<8x16xf32>
    tpu.vector_store %arg4[%c0_6, %c0_7], %7 {strides = array<i32>} : memref<8x16xf32, #tpu.memory_space<vmem>>, vector<8x16xf32>,
    return
  }
  func.func @transform_0(%arg0: i32) -> (i32, i32) {
    %c0_i32 = arith.constant 0 : i32
    %c0_i32_0 = arith.constant 0 : i32
    return %arg0, %c0_i32 : i32, i32
  }
  func.func @transform_1(%arg0: i32) -> (i32, i32) {
    %c0_i32 = arith.constant 0 : i32
    %c0_i32_0 = arith.constant 0 : i32
    %c0_i32_1 = arith.constant 0 : i32
    return %c0_i32, %c0_i32_0 : i32, i32
  }
  func.func @transform_2(%arg0: i32) -> (i32, i32) {
    %c0_i32 = arith.constant 0 : i32
    %c0_i32_0 = arith.constant 0 : i32
    %c0_i32_1 = arith.constant 0 : i32
    return %c0_i32, %c0_i32_0 : i32, i32
  }
  func.func @transform_3(%arg0: i32) -> (i32, i32) {
    %c0_i32 = arith.constant 0 : i32
    %c0_i32_0 = arith.constant 0 : i32
    return %arg0, %c0_i32 : i32, i32
  }
}

</mosaic_0001>

<bundles_post_ra>
// kernel: tpu_custom_call.1
= control target key start
LH: loop header
LB: loop body
LE: loop exit
PB: predicated region body
PF: predicated region fallthrough
CT: control target
= control target key end

     0   :  { %8 = vsyncpa [#allocation3], 0  ;;  %s319_s0 = inlined_call_operand.hbm [shape: f32[2,16], index: 0, kind: input, shape index: {}]   ;;  %s320_s1 = inlined_call_operand.hbm [shape: f32[16,16], index: 1, kind: input, shape index: {}]   ;;  %s321_s2 = inlined_call_operand.vmem [shape: f32[1,16], index: 2, kind: input, shape index: {}]   ;;  %s322_s3 = inlined_call_operand.hbm [shape: f32[2,16], index: 3, kind: output, shape index: {}]  }
   0x1   :  { %9 = vsyncpa [#allocation6], 0 }
   0x2   :  { %10 = vsyncpa [#allocation4], 0 }
   0x3   :  { %15 = vsyncadd [#allocation3], 96  ;;  %s244_s12 = smov [#allocation2]   ;;  %s172_s16 = scalar_lea.hbm %s319_s0, 32 }
   0x4   :  { %s16_s13 = sshll.u32 %s244_s12, 4  ;;  %p173_p0 = scmp.ne.s32.totalorder %s319_s0, %s172_s16  ;;  %s17_s13 = int_to_ptr.vmem [resolvable:$true] %s16_s13 }
   0x5   :  { %p176_p1 = scmp.lt.u32.totalorder %s172_s16, %s319_s0 }
   0x7   :  { %p178_p2 = pnand %p176_p1, %p173_p0 }
   0x9   :  { %181 = shalt.err (!%p178_p2)
}
   0xa   :  { %s182_s21 = scalar_lea.vmem %s17_s13, 32  ;;  %s186_s22 = scalar_lea.vmem %s17_s13, 128 }
   0xb   :  { %p183_p3 = scmp.ne.s32.totalorder %s17_s13, %s182_s21  ;;  %p187_p4 = scmp.lt.s32.totalorder %s17_s13, %s17_s13 }
   0xc   :  { %p188_p5 = scmp.lt.s32.totalorder %s186_s22, %s182_s21 }
   0xe   :  { %p189_p6 = por %p188_p5, %p187_p4 }
  0x10   :  { %p190_p7 = pnand %p189_p6, %p183_p3 }
  0x12   :  { %193 = shalt.err (!%p190_p7)
}
  0x13   :  { %s245_s23 = smov 32   ;;  %s246_s24 = smov 2  }
  0x14   :  { %22 = dma.hbm_to_vmem [thread:$0]  %s319_s0, 32, %s17_s13, [#allocation3], %s245_s23, %s245_s23, %s246_s24  }
  0x15   :  { %s247_s27 = smov [#allocation5]   ;;  %s194_s4 = scalar_lea.hbm %s320_s1, 256 }
  0x16   :  { %s28_s28 = sshll.u32 %s247_s27, 4  ;;  %p195_p8 = scmp.ne.s32.totalorder %s320_s1, %s194_s4  ;;  %s29_s28 = int_to_ptr.vmem [resolvable:$true] %s28_s28 }
  0x17   :  { %p198_p9 = scmp.lt.u32.totalorder %s194_s4, %s320_s1 }
  0x19   :  { %p200_p10 = pnand %p198_p9, %p195_p8 }
  0x1b   :  { %203 = shalt.err (!%p200_p10)
}
  0x1c   :  { %s204_s9 = scalar_lea.vmem %s29_s28, 256  ;;  %p209_p12 = scmp.lt.s32.totalorder %s29_s28, %s29_s28 }
  0x1d   :  { %p205_p11 = scmp.ne.s32.totalorder %s29_s28, %s204_s9  ;;  %p210_p13 = scmp.lt.s32.totalorder %s204_s9, %s204_s9 }
  0x1f   :  { %p211_p0 = por %p210_p13, %p209_p12 }
  0x21   :  { %p212_p1 = pnand %p211_p0, %p205_p11 }
  0x23   :  { %215 = shalt.err (!%p212_p1)
}
  0x24   :  { %s248_s0 = smov 128   ;;  %s249_s10 = smov 8  }
  0x25   :  { %34 = dma.hbm_to_vmem [thread:$0]  %s320_s1, 256, %s29_s28, [#allocation6], %s248_s0, %s248_s0, %s249_s10  }
  0x26   :  { %238 = dma.done.wait [#allocation3], 128  }
  0x27   :  { %239 = vsyncadd [#allocation3], 4294967168 }
  0x28   :  { %240 = dma.done.wait [#allocation6], 256  }
  0x29   :  { %241 = vsyncadd [#allocation6], 4294967040  ;;  %v250_v0 = vmov 0.0|0.0   ;;  %vm251_vm0 = vmmov 0   ;;  %v252_v1 = vmov 0.0   ;;  %v44_v2 = vld [vmem:[#allocation5] sm:$0xff] }
  0x2a   :  { %159 = vmatprep.subr.bf16.mxu0 %v250_v0  ;;  %156 = vmatprep.mubr.msk.f32.mxu0 %vm251_vm0, %v252_v1  ;;  %v45_v3 = vld [vmem:[#allocation5 + $0x8] sm:$0xff]  ;;  %v43_v5 = vld [vmem:[#allocation2] sm:$0xff]  ;;  %vm53_vm1 = vcmask 130048  }
  0x2b   :  { %v160_v4 = vpack.c.bf16 %v45_v3, %v44_v2  ;;  %v147_v6 = vld [vmem:[%s321_s2] ss:$0 sm:$0xff] }
  0x2d   :  { %161 = vmatpush3.bf16.msra.mxu0 %v160_v4 }
  0x30   :  { %157 = vmatmul.mubr.msk.f32.vlgmr.msra.gmra.mrb[0].mxu0 %vm53_vm1, %v43_v5 }
 0x103   :  { %v123_v7 = vpop.f32.mrb[0].mxu0 }
 0x104   :  { %v124_v8 = vadd.f32 %v147_v6, %v123_v7  ;;  %v158_v9 = vpop.f32.mrb[1].mxu0 }
 0x106   :  { %v127_v10 = vmax.f32 %v124_v8, 0.0 }
 0x108   :  { %128 = vst.msk [vmem:[#allocation7] sm:$0xff] %vm53_vm1, %v127_v10 }
 0x109   :  { %133 = vsyncadd [#allocation4], 96  ;;  %s253_s1 = smov [#allocation7]  }
 0x10a   :  { %s134_s15 = sshll.u32 %s253_s1, 4  ;;  %s135_s15 = int_to_ptr.vmem [resolvable:$true] %s134_s15 }
 0x10b   :  { %s216_s16 = scalar_lea.vmem %s135_s15, 32  ;;  %s220_s17 = scalar_lea.vmem %s135_s15, 128 }
 0x10c   :  { %p217_p2 = scmp.ne.s32.totalorder %s135_s15, %s216_s16  ;;  %p221_p3 = scmp.lt.s32.totalorder %s135_s15, %s135_s15 }
 0x10d   :  { %p222_p4 = scmp.lt.s32.totalorder %s220_s17, %s216_s16 }
 0x10f   :  { %p223_p5 = por %p222_p4, %p221_p3 }
 0x111   :  { %p224_p6 = pnand %p223_p5, %p217_p2 }
 0x113   :  { %227 = shalt.err (!%p224_p6)
}
 0x114   :  { %s228_s2 = scalar_lea.hbm %s322_s3, 32 }
 0x115   :  { %p229_p7 = scmp.ne.s32.totalorder %s322_s3, %s228_s2  ;;  %p232_p8 = scmp.lt.u32.totalorder %s228_s2, %s322_s3 }
 0x117   :  { %p234_p9 = pnand %p232_p8, %p229_p7 }
 0x119   :  { %237 = shalt.err (!%p234_p9)
}
 0x11a   :  { %140 = dma.vmem_to_hbm [thread:$0]  %s135_s15, 32, %s322_s3, [#allocation4], %s245_s23, %s245_s23, %s246_s24  }
 0x11b   :  { %242 = dma.done.wait [#allocation4], 128  }
 0x11c   :  { %243 = vsyncadd [#allocation4], 4294967168 }
 0x11d   :  { %144 = vsyncpa [#allocation3], 1 }
 0x11e   :  { %145 = vsyncpa [#allocation6], 1 }
 0x11f   :  { %146 = vsyncpa [#allocation4], 1 }

</bundles_post_ra>
